<compile_context>
chip_gen: v7x
topology: tpu7x:2x2x1
jax: 0.10.0
libtpu: 0.0.40
codegen_flags: <defaults>
</compile_context>

<pallas_src>
import functools

import jax
import jax.numpy as jnp
import numpy as np
from jax.experimental import pallas as pl
from jax.experimental.pallas import tpu as pltpu


# ------------------------------ fused kernel --------------------------------

def _encoder_kernel(col1_ref, w1_ref, b1_ref,
                    sel_ref, w2_ref, b2_ref,
                    prev_ref,
                    wfc1_ref, bfc1_ref,
                    wfc2_ref, bfc2_ref,
                    out_ref,
                    h2_s, zf_s, *,
                    gammas, n_taps, batch, s2, oc2):
    f32 = jnp.float32
    bf16 = jnp.bfloat16

    # ---- conv1, transposed (lane-dense): (8,36)@(36,128) -> (8,128)
    h1 = jnp.dot(w1_ref[...], col1_ref[...], preferred_element_type=f32)
    h1 = jnp.maximum(h1 + b1_ref[...], 0.0)

    # ---- conv2 patch gather: ONE matmul against 0/1 selection (K=128)
    #      (8,128)@(128, 9*32) -> (8, 288); columns are k-major tap blocks.
    pbig = jnp.dot(h1.astype(bf16), sel_ref[...], preferred_element_type=f32)
    r = s2 * batch
    patches = jnp.concatenate(
        [pbig[:, k * r:(k + 1) * r] for k in range(n_taps)], axis=0)  # (72, 32)

    # ---- conv2 combine: ONE matmul (16,72)@(72,32), bias + ReLU in f32
    h2 = jnp.dot(w2_ref[...], patches.astype(bf16), preferred_element_type=f32)
    h2 = jnp.maximum(h2 + b2_ref[...], 0.0)                           # (16, 32)

    # ---- channel-major flatten (PyTorch view(N,-1)) via VMEM scratch relayout:
    #      zf[n, c*S2+s] = h2[c, n*S2+s]; 32 aligned 16-lane copies.
    h2_s[...] = h2
    for n in range(batch):
        for c in range(oc2):
            zf_s[n:n + 1, c * s2:(c + 1) * s2] = \
                h2_s[c:c + 1, n * s2:(n + 1) * s2]
    z = zf_s[...]                                                     # (2, 256)

    # ---- eligibility-trace memory: VPU scale + add (f32, lane-dense)
    for t in range(len(gammas)):
        z = z + gammas[t] * prev_ref[t]

    # ---- fc1: ONE matmul (2,256)@(256,32), bias + ReLU
    o1 = jnp.dot(z.astype(bf16), wfc1_ref[...], preferred_element_type=f32)
    o1 = jnp.maximum(o1 + bfc1_ref[...], 0.0)

    # ---- fc2: (2,32)@(32,32)
    o2 = jnp.dot(o1.astype(bf16), wfc2_ref[...], preferred_element_type=f32)
    out_ref[...] = (o2 + bfc2_ref[...]).astype(out_ref.dtype)


# ------------------------------ host-side glue -------------------------------

def _im2col_T(x, kh=3, kw=3, stride=2, pad=1):
    """NCHW -> (C*kh*kw, N*Ho*Wo); rows (c,i,j) match OIHW flatten, cols (n,oh,ow)."""
    xp = jnp.pad(x, ((0, 0), (0, 0), (pad, pad), (pad, pad)))
    N, C, Hp, Wp = xp.shape
    Ho = (Hp - kh) // stride + 1
    Wo = (Wp - kw) // stride + 1
    taps = []
    for i in range(kh):
        for j in range(kw):
            taps.append(xp[:, :, i:i + stride * Ho:stride, j:j + stride * Wo:stride])
    col = jnp.stack(taps, axis=2)              # (N, C, kh*kw, Ho, Wo)
    col = col.transpose(1, 2, 0, 3, 4)         # (C, kh*kw, N, Ho, Wo)
    return col.reshape(C * kh * kw, N * Ho * Wo), Ho, Wo


def _conv2_selection(N, H1, W1, Ho, Wo, kh=3, kw=3, stride=2, pad=1):
    """0/1 matrix (N*H1*W1, kh*kw*N*Ho*Wo): h1 @ sel == per-tap conv2 patches."""
    Q = N * H1 * W1
    R = N * Ho * Wo
    sel = np.zeros((Q, kh * kw * R), np.float32)
    for i in range(kh):
        for j in range(kw):
            k = i * kw + j
            for n in range(N):
                for oh in range(Ho):
                    for ow in range(Wo):
                        y = stride * oh + i - pad
                        x = stride * ow + j - pad
                        if 0 <= y < H1 and 0 <= x < W1:
                            q = n * H1 * W1 + y * W1 + x
                            r = n * Ho * Wo + oh * Wo + ow
                            sel[q, k * R + r] = 1.0
    return sel


def _full_spec(shape):
    nd = len(shape)
    return pl.BlockSpec(tuple(shape), lambda i, nd=nd: (0,) * nd)


def encoder_forward(params, x, prev_latents, *, gamma, mem_len):
    """Functional Encoder.forward(x, prev_latents) with mem_location == 0."""
    N, C, H, W = x.shape
    OC1 = params['w1'].shape[0]
    OC2 = params['w2'].shape[0]
    hidden = params['wfc1'].shape[1]
    latent = params['wfc2'].shape[1]
    bf16 = jnp.bfloat16
    f32 = jnp.float32

    # conv1 operands (im2col of the 8 KB input stays host-side; fused by XLA)
    col1, Ho1, Wo1 = _im2col_T(x.astype(f32))
    col1 = col1.astype(bf16)                                     # (36, 128)
    w1f = params['w1'].reshape(OC1, C * 9).astype(bf16)          # (8, 36)
    b1c = params['b1'].reshape(OC1, 1).astype(f32)

    # conv2 operands: 0/1 selection (exact in bf16) + repacked tap weights
    Ho2 = (Ho1 + 2 - 3) // 2 + 1
    Wo2 = (Wo1 + 2 - 3) // 2 + 1
    S2 = Ho2 * Wo2                                               # 16
    sel = jnp.asarray(_conv2_selection(N, Ho1, Wo1, Ho2, Wo2), dtype=bf16)  # (128,288)
    w2big = params['w2'].transpose(0, 2, 3, 1).reshape(OC2, 9 * OC1).astype(bf16)  # (16,72)
    b2c = params['b2'].reshape(OC2, 1).astype(f32)

    # eligibility memory: (N, T, F) -> (T, N, F), features already in PyTorch order
    prevT = prev_latents.astype(f32).transpose(1, 0, 2)

    wfc1 = params['wfc1'].astype(bf16)                           # (256, 32)
    bfc1 = params['bfc1'].reshape(1, hidden).astype(f32)
    wfc2 = params['wfc2'].astype(bf16)                           # (32, 32)
    bfc2 = params['bfc2'].reshape(1, latent).astype(f32)

    gammas = tuple(float(gamma) ** (t + 1) for t in range(mem_len))

    kern = functools.partial(_encoder_kernel, gammas=gammas, n_taps=9,
                             batch=N, s2=S2, oc2=OC2)

    operands = (col1, w1f, b1c,
                sel, w2big, b2c,
                prevT,
                wfc1, bfc1, wfc2, bfc2)

    return pl.pallas_call(
        kern,
        out_shape=jax.ShapeDtypeStruct((N, latent), jnp.float32),
        grid=(1,),
        in_specs=[_full_spec(op.shape) for op in operands],
        out_specs=_full_spec((N, latent)),
        scratch_shapes=[pltpu.VMEM((OC2, S2 * N), jnp.float32),   # h2 staging
                        pltpu.VMEM((N, OC2 * S2), jnp.float32)],  # flattened z
        compiler_params=pltpu.CompilerParams(
            dimension_semantics=("arbitrary",)),
    )(*operands)


# --------------------------- pure-JAX reference ------------------------------

def reference_forward(params, x, prev_latents, gamma, mem_len):
    dn = ('NCHW', 'OIHW', 'NCHW')
    y = jax.lax.conv_general_dilated(x, params['w1'], (2, 2), [(1, 1), (1, 1)],
                                     dimension_numbers=dn)
    y = jnp.maximum(y + params['b1'].reshape(1, -1, 1, 1), 0.0)
    y = jax.lax.conv_general_dilated(y, params['w2'], (2, 2), [(1, 1), (1, 1)],
                                     dimension_numbers=dn)
    y = jnp.maximum(y + params['b2'].reshape(1, -1, 1, 1), 0.0)
    feat = y.reshape(x.shape[0], -1).astype(jnp.float32)
    scales = gamma ** jnp.arange(1, mem_len + 1, dtype=jnp.float32)
    mem = jnp.sum(prev_latents * scales[None, :, None], axis=1)
    z = feat + mem
    z = jnp.maximum(z @ params['wfc1'] + params['bfc1'], 0.0)
    z = z @ params['wfc2'] + params['bfc2']
    return z


# ----------------------------------- main ------------------------------------

if __name__ == "__main__":
    N, C, H, W = 2, 4, 16, 16
    OC1, OC2 = 8, 16
    latent_dim, hidden = 32, 32
    mem_len, gamma = 2, 0.9
    F = OC2 * (H // 4) * (W // 4)   # 16 * 4 * 4 = 256

    key = jax.random.PRNGKey(0)
    ks = jax.random.split(key, 10)
    x = jax.random.normal(ks[0], (N, C, H, W), jnp.float32)
    # prev_latents at mem_location=0 lives in the flattened feature space.
    prev_latents = 0.1 * jax.random.normal(ks[1], (N, mem_len, F), jnp.float32)

    params = {
        'w1':   0.10 * jax.random.normal(ks[2], (OC1, C, 3, 3), jnp.float32),
        'b1':   0.10 * jax.random.normal(ks[3], (OC1,), jnp.float32),
        'w2':   0.10 * jax.random.normal(ks[4], (OC2, OC1, 3, 3), jnp.float32),
        'b2':   0.10 * jax.random.normal(ks[5], (OC2,), jnp.float32),
        'wfc1': 0.05 * jax.random.normal(ks[6], (F, hidden), jnp.float32),
        'bfc1': 0.05 * jax.random.normal(ks[7], (hidden,), jnp.float32),
        'wfc2': 0.05 * jax.random.normal(ks[8], (hidden, latent_dim), jnp.float32),
        'bfc2': 0.05 * jax.random.normal(ks[9], (latent_dim,), jnp.float32),
    }

    fwd = jax.jit(functools.partial(encoder_forward, gamma=gamma, mem_len=mem_len))
    out = jax.block_until_ready(fwd(params, x, prev_latents))

    ref = reference_forward(params, x, prev_latents, gamma, mem_len)
    assert out.shape == (N, latent_dim), out.shape
    # bf16 MXU operands (f32 accumulation) per perf review -> relaxed tolerance.
    np.testing.assert_allclose(np.asarray(out), np.asarray(ref), rtol=3e-2, atol=3e-2)
    print("KERNEL_OK")
</pallas_src>

<mosaic_0001>
module attributes {stable_mosaic.version = 11 : i64} {
  func.func @_encoder_kernel(%arg0: i32, %arg1: memref<36x128xbf16, #tpu.memory_space<vmem>>, %arg2: memref<8x36xbf16, #tpu.memory_space<vmem>>, %arg3: memref<8x1xf32, #tpu.memory_space<vmem>>, %arg4: memref<128x288xbf16, #tpu.memory_space<vmem>>, %arg5: memref<16x72xbf16, #tpu.memory_space<vmem>>, %arg6: memref<16x1xf32, #tpu.memory_space<vmem>>, %arg7: memref<2x2x256xf32, #tpu.memory_space<vmem>>, %arg8: memref<256x32xbf16, #tpu.memory_space<vmem>>, %arg9: memref<1x32xf32, #tpu.memory_space<vmem>>, %arg10: memref<32x32xbf16, #tpu.memory_space<vmem>>, %arg11: memref<1x32xf32, #tpu.memory_space<vmem>>, %arg12: memref<2x32xf32, #tpu.memory_space<vmem>>, %arg13: memref<16x32xf32, #tpu.memory_space<vmem>>, %arg14: memref<2x256xf32, #tpu.memory_space<vmem>>) attributes {dimension_semantics = [#tpu.dimension_semantics<arbitrary>], iteration_bounds = array<i64: 1>, scalar_prefetch = 0 : i64, scratch_operands = 2 : i64, tpu.core_type = #tpu.core_type<tc>, window_params = [{pipeline_mode = #tpu.pipeline_mode<synchronous>, transform_indices = @transform_0, window_bounds = array<i64: 36, 128>}, {pipeline_mode = #tpu.pipeline_mode<synchronous>, transform_indices = @transform_1, window_bounds = array<i64: 8, 36>}, {pipeline_mode = #tpu.pipeline_mode<synchronous>, transform_indices = @transform_2, window_bounds = array<i64: 8, 1>}, {pipeline_mode = #tpu.pipeline_mode<synchronous>, transform_indices = @transform_3, window_bounds = array<i64: 128, 288>}, {pipeline_mode = #tpu.pipeline_mode<synchronous>, transform_indices = @transform_4, window_bounds = array<i64: 16, 72>}, {pipeline_mode = #tpu.pipeline_mode<synchronous>, transform_indices = @transform_5, window_bounds = array<i64: 16, 1>}, {pipeline_mode = #tpu.pipeline_mode<synchronous>, transform_indices = @transform_6, window_bounds = array<i64: 2, 2, 256>}, {pipeline_mode = #tpu.pipeline_mode<synchronous>, transform_indices = @transform_7, window_bounds = array<i64: 256, 32>}, {pipeline_mode = #tpu.pipeline_mode<synchronous>, transform_indices = @transform_8, window_bounds = array<i64: 1, 32>}, {pipeline_mode = #tpu.pipeline_mode<synchronous>, transform_indices = @transform_9, window_bounds = array<i64: 32, 32>}, {pipeline_mode = #tpu.pipeline_mode<synchronous>, transform_indices = @transform_10, window_bounds = array<i64: 1, 32>}, {pipeline_mode = #tpu.pipeline_mode<synchronous>, transform_indices = @transform_11, window_bounds = array<i64: 2, 32>}]} {
    %c0 = arith.constant 0 : index
    %c0_0 = arith.constant 0 : index
    %0 = vector.load %arg2[%c0, %c0_0] : memref<8x36xbf16, #tpu.memory_space<vmem>>, vector<8x36xbf16>
    %c0_1 = arith.constant 0 : index
    %c0_2 = arith.constant 0 : index
    %1 = vector.load %arg1[%c0_1, %c0_2] : memref<36x128xbf16, #tpu.memory_space<vmem>>, vector<36x128xbf16>
    %cst = arith.constant dense<0.000000e+00> : vector<8x128xf32>
    %2 = tpu.matmul %0, %1, %cst {dimension_numbers = #tpu.dot_dimension_numbers<[1], [0], [0], [1], [0, 0, 1, 1], [], []>} : vector<8x36xbf16>, vector<36x128xbf16>, vector<8x128xf32> -> vector<8x128xf32>
    %c0_3 = arith.constant 0 : index
    %c0_4 = arith.constant 0 : index
    %3 = vector.load %arg3[%c0_3, %c0_4] : memref<8x1xf32, #tpu.memory_space<vmem>>, vector<8x1xf32>
    %4 = vector.broadcast %3 : vector<8x1xf32> to vector<8x128xf32>
    %5 = arith.addf %2, %4 : vector<8x128xf32>
    %cst_5 = arith.constant 0.000000e+00 : f32
    %6 = vector.broadcast %cst_5 : f32 to vector<8x128xf32>
    %7 = arith.maximumf %5, %6 : vector<8x128xf32>
    %8 = arith.truncf %7 : vector<8x128xf32> to vector<8x128xbf16>
    %c0_6 = arith.constant 0 : index
    %c0_7 = arith.constant 0 : index
    %9 = vector.load %arg4[%c0_6, %c0_7] : memref<128x288xbf16, #tpu.memory_space<vmem>>, vector<128x288xbf16>
    %cst_8 = arith.constant dense<0.000000e+00> : vector<8x288xf32>
    %10 = tpu.matmul %8, %9, %cst_8 {dimension_numbers = #tpu.dot_dimension_numbers<[1], [0], [0], [1], [0, 0, 1, 1], [], []>} : vector<8x128xbf16>, vector<128x288xbf16>, vector<8x288xf32> -> vector<8x288xf32>
    %11 = vector.extract_strided_slice %10 {offsets = [0, 0], sizes = [8, 32], strides = [1, 1]} : vector<8x288xf32> to vector<8x32xf32>
    %12 = vector.extract_strided_slice %10 {offsets = [0, 32], sizes = [8, 32], strides = [1, 1]} : vector<8x288xf32> to vector<8x32xf32>
    %13 = vector.extract_strided_slice %10 {offsets = [0, 64], sizes = [8, 32], strides = [1, 1]} : vector<8x288xf32> to vector<8x32xf32>
    %14 = vector.extract_strided_slice %10 {offsets = [0, 96], sizes = [8, 32], strides = [1, 1]} : vector<8x288xf32> to vector<8x32xf32>
    %15 = vector.extract_strided_slice %10 {offsets = [0, 128], sizes = [8, 32], strides = [1, 1]} : vector<8x288xf32> to vector<8x32xf32>
    %16 = vector.extract_strided_slice %10 {offsets = [0, 160], sizes = [8, 32], strides = [1, 1]} : vector<8x288xf32> to vector<8x32xf32>
    %17 = vector.extract_strided_slice %10 {offsets = [0, 192], sizes = [8, 32], strides = [1, 1]} : vector<8x288xf32> to vector<8x32xf32>
    %18 = vector.extract_strided_slice %10 {offsets = [0, 224], sizes = [8, 32], strides = [1, 1]} : vector<8x288xf32> to vector<8x32xf32>
    %19 = vector.extract_strided_slice %10 {offsets = [0, 256], sizes = [8, 32], strides = [1, 1]} : vector<8x288xf32> to vector<8x32xf32>
    %20 = tpu.concatenate %11, %12, %13, %14, %15, %16, %17, %18, %19 in 0 : vector<8x32xf32>, vector<8x32xf32>, vector<8x32xf32>, vector<8x32xf32>, vector<8x32xf32>, vector<8x32xf32>, vector<8x32xf32>, vector<8x32xf32>, vector<8x32xf32> -> vector<72x32xf32>
    %c0_9 = arith.constant 0 : index
    %c0_10 = arith.constant 0 : index
    %21 = vector.load %arg5[%c0_9, %c0_10] : memref<16x72xbf16, #tpu.memory_space<vmem>>, vector<16x72xbf16>
    %22 = arith.truncf %20 : vector<72x32xf32> to vector<72x32xbf16>
    %cst_11 = arith.constant dense<0.000000e+00> : vector<16x32xf32>
    %23 = tpu.matmul %21, %22, %cst_11 {dimension_numbers = #tpu.dot_dimension_numbers<[1], [0], [0], [1], [0, 0, 1, 1], [], []>} : vector<16x72xbf16>, vector<72x32xbf16>, vector<16x32xf32> -> vector<16x32xf32>
    %c0_12 = arith.constant 0 : index
    %c0_13 = arith.constant 0 : index
    %24 = vector.load %arg6[%c0_12, %c0_13] : memref<16x1xf32, #tpu.memory_space<vmem>>, vector<16x1xf32>
    %25 = vector.broadcast %24 : vector<16x1xf32> to vector<16x32xf32>
    %26 = arith.addf %23, %25 : vector<16x32xf32>
    %cst_14 = arith.constant 0.000000e+00 : f32
    %27 = vector.broadcast %cst_14 : f32 to vector<16x32xf32>
    %28 = arith.maximumf %26, %27 : vector<16x32xf32>
    %c0_15 = arith.constant 0 : index
    %c0_16 = arith.constant 0 : index
    %29 = vector.load %arg13[%c0_15, %c0_16] : memref<16x32xf32, #tpu.memory_space<vmem>>, vector<16x32xf32>
    tpu.vector_store %arg13[%c0_15, %c0_16], %28 {strides = array<i32>} : memref<16x32xf32, #tpu.memory_space<vmem>>, vector<16x32xf32>,
    %c0_17 = arith.constant 0 : index
    %c0_18 = arith.constant 0 : index
    %30 = vector.load %arg13[%c0_17, %c0_18] : memref<16x32xf32, #tpu.memory_space<vmem>>, vector<1x16xf32>
    %c0_19 = arith.constant 0 : index
    %c0_20 = arith.constant 0 : index
    %31 = vector.load %arg14[%c0_19, %c0_20] : memref<2x256xf32, #tpu.memory_space<vmem>>, vector<1x16xf32>
    tpu.vector_store %arg14[%c0_19, %c0_20], %30 {strides = array<i32>} : memref<2x256xf32, #tpu.memory_space<vmem>>, vector<1x16xf32>,
    %c1 = arith.constant 1 : index
    %c0_21 = arith.constant 0 : index
    %32 = vector.load %arg13[%c1, %c0_21] : memref<16x32xf32, #tpu.memory_space<vmem>>, vector<1x16xf32>
    %c0_22 = arith.constant 0 : index
    %c16 = arith.constant 16 : index
    %33 = vector.load %arg14[%c0_22, %c16] : memref<2x256xf32, #tpu.memory_space<vmem>>, vector<1x16xf32>
    tpu.vector_store %arg14[%c0_22, %c16], %32 {strides = array<i32>} : memref<2x256xf32, #tpu.memory_space<vmem>>, vector<1x16xf32>,
    %c2 = arith.constant 2 : index
    %c0_23 = arith.constant 0 : index
    %34 = vector.load %arg13[%c2, %c0_23] : memref<16x32xf32, #tpu.memory_space<vmem>>, vector<1x16xf32>
    %c0_24 = arith.constant 0 : index
    %c32 = arith.constant 32 : index
    %35 = vector.load %arg14[%c0_24, %c32] : memref<2x256xf32, #tpu.memory_space<vmem>>, vector<1x16xf32>
    tpu.vector_store %arg14[%c0_24, %c32], %34 {strides = array<i32>} : memref<2x256xf32, #tpu.memory_space<vmem>>, vector<1x16xf32>,
    %c3 = arith.constant 3 : index
    %c0_25 = arith.constant 0 : index
    %36 = vector.load %arg13[%c3, %c0_25] : memref<16x32xf32, #tpu.memory_space<vmem>>, vector<1x16xf32>
    %c0_26 = arith.constant 0 : index
    %c48 = arith.constant 48 : index
    %37 = vector.load %arg14[%c0_26, %c48] : memref<2x256xf32, #tpu.memory_space<vmem>>, vector<1x16xf32>
    tpu.vector_store %arg14[%c0_26, %c48], %36 {strides = array<i32>} : memref<2x256xf32, #tpu.memory_space<vmem>>, vector<1x16xf32>,
    %c4 = arith.constant 4 : index
    %c0_27 = arith.constant 0 : index
    %38 = vector.load %arg13[%c4, %c0_27] : memref<16x32xf32, #tpu.memory_space<vmem>>, vector<1x16xf32>
    %c0_28 = arith.constant 0 : index
    %c64 = arith.constant 64 : index
    %39 = vector.load %arg14[%c0_28, %c64] : memref<2x256xf32, #tpu.memory_space<vmem>>, vector<1x16xf32>
    tpu.vector_store %arg14[%c0_28, %c64], %38 {strides = array<i32>} : memref<2x256xf32, #tpu.memory_space<vmem>>, vector<1x16xf32>,
    %c5 = arith.constant 5 : index
    %c0_29 = arith.constant 0 : index
    %40 = vector.load %arg13[%c5, %c0_29] : memref<16x32xf32, #tpu.memory_space<vmem>>, vector<1x16xf32>
    %c0_30 = arith.constant 0 : index
    %c80 = arith.constant 80 : index
    %41 = vector.load %arg14[%c0_30, %c80] : memref<2x256xf32, #tpu.memory_space<vmem>>, vector<1x16xf32>
    tpu.vector_store %arg14[%c0_30, %c80], %40 {strides = array<i32>} : memref<2x256xf32, #tpu.memory_space<vmem>>, vector<1x16xf32>,
    %c6 = arith.constant 6 : index
    %c0_31 = arith.constant 0 : index
    %42 = vector.load %arg13[%c6, %c0_31] : memref<16x32xf32, #tpu.memory_space<vmem>>, vector<1x16xf32>
    %c0_32 = arith.constant 0 : index
    %c96 = arith.constant 96 : index
    %43 = vector.load %arg14[%c0_32, %c96] : memref<2x256xf32, #tpu.memory_space<vmem>>, vector<1x16xf32>
    tpu.vector_store %arg14[%c0_32, %c96], %42 {strides = array<i32>} : memref<2x256xf32, #tpu.memory_space<vmem>>, vector<1x16xf32>,
    %c7 = arith.constant 7 : index
    %c0_33 = arith.constant 0 : index
    %44 = vector.load %arg13[%c7, %c0_33] : memref<16x32xf32, #tpu.memory_space<vmem>>, vector<1x16xf32>
    %c0_34 = arith.constant 0 : index
    %c112 = arith.constant 112 : index
    %45 = vector.load %arg14[%c0_34, %c112] : memref<2x256xf32, #tpu.memory_space<vmem>>, vector<1x16xf32>
    tpu.vector_store %arg14[%c0_34, %c112], %44 {strides = array<i32>} : memref<2x256xf32, #tpu.memory_space<vmem>>, vector<1x16xf32>,
    %c8 = arith.constant 8 : index
    %c0_35 = arith.constant 0 : index
    %46 = vector.load %arg13[%c8, %c0_35] : memref<16x32xf32, #tpu.memory_space<vmem>>, vector<1x16xf32>
    %c0_36 = arith.constant 0 : index
    %c128 = arith.constant 128 : index
    %47 = vector.load %arg14[%c0_36, %c128] : memref<2x256xf32, #tpu.memory_space<vmem>>, vector<1x16xf32>
    tpu.vector_store %arg14[%c0_36, %c128], %46 {strides = array<i32>} : memref<2x256xf32, #tpu.memory_space<vmem>>, vector<1x16xf32>,
    %c9 = arith.constant 9 : index
    %c0_37 = arith.constant 0 : index
    %48 = vector.load %arg13[%c9, %c0_37] : memref<16x32xf32, #tpu.memory_space<vmem>>, vector<1x16xf32>
    %c0_38 = arith.constant 0 : index
    %c144 = arith.constant 144 : index
    %49 = vector.load %arg14[%c0_38, %c144] : memref<2x256xf32, #tpu.memory_space<vmem>>, vector<1x16xf32>
    tpu.vector_store %arg14[%c0_38, %c144], %48 {strides = array<i32>} : memref<2x256xf32, #tpu.memory_space<vmem>>, vector<1x16xf32>,
    %c10 = arith.constant 10 : index
    %c0_39 = arith.constant 0 : index
    %50 = vector.load %arg13[%c10, %c0_39] : memref<16x32xf32, #tpu.memory_space<vmem>>, vector<1x16xf32>
    %c0_40 = arith.constant 0 : index
    %c160 = arith.constant 160 : index
    %51 = vector.load %arg14[%c0_40, %c160] : memref<2x256xf32, #tpu.memory_space<vmem>>, vector<1x16xf32>
    tpu.vector_store %arg14[%c0_40, %c160], %50 {strides = array<i32>} : memref<2x256xf32, #tpu.memory_space<vmem>>, vector<1x16xf32>,
    %c11 = arith.constant 11 : index
    %c0_41 = arith.constant 0 : index
    %52 = vector.load %arg13[%c11, %c0_41] : memref<16x32xf32, #tpu.memory_space<vmem>>, vector<1x16xf32>
    %c0_42 = arith.constant 0 : index
    %c176 = arith.constant 176 : index
    %53 = vector.load %arg14[%c0_42, %c176] : memref<2x256xf32, #tpu.memory_space<vmem>>, vector<1x16xf32>
    tpu.vector_store %arg14[%c0_42, %c176], %52 {strides = array<i32>} : memref<2x256xf32, #tpu.memory_space<vmem>>, vector<1x16xf32>,
    %c12 = arith.constant 12 : index
    %c0_43 = arith.constant 0 : index
    %54 = vector.load %arg13[%c12, %c0_43] : memref<16x32xf32, #tpu.memory_space<vmem>>, vector<1x16xf32>
    %c0_44 = arith.constant 0 : index
    %c192 = arith.constant 192 : index
    %55 = vector.load %arg14[%c0_44, %c192] : memref<2x256xf32, #tpu.memory_space<vmem>>, vector<1x16xf32>
    tpu.vector_store %arg14[%c0_44, %c192], %54 {strides = array<i32>} : memref<2x256xf32, #tpu.memory_space<vmem>>, vector<1x16xf32>,
    %c13 = arith.constant 13 : index
    %c0_45 = arith.constant 0 : index
    %56 = vector.load %arg13[%c13, %c0_45] : memref<16x32xf32, #tpu.memory_space<vmem>>, vector<1x16xf32>
    %c0_46 = arith.constant 0 : index
    %c208 = arith.constant 208 : index
    %57 = vector.load %arg14[%c0_46, %c208] : memref<2x256xf32, #tpu.memory_space<vmem>>, vector<1x16xf32>
    tpu.vector_store %arg14[%c0_46, %c208], %56 {strides = array<i32>} : memref<2x256xf32, #tpu.memory_space<vmem>>, vector<1x16xf32>,
    %c14 = arith.constant 14 : index
    %c0_47 = arith.constant 0 : index
    %58 = vector.load %arg13[%c14, %c0_47] : memref<16x32xf32, #tpu.memory_space<vmem>>, vector<1x16xf32>
    %c0_48 = arith.constant 0 : index
    %c224 = arith.constant 224 : index
    %59 = vector.load %arg14[%c0_48, %c224] : memref<2x256xf32, #tpu.memory_space<vmem>>, vector<1x16xf32>
    tpu.vector_store %arg14[%c0_48, %c224], %58 {strides = array<i32>} : memref<2x256xf32, #tpu.memory_space<vmem>>, vector<1x16xf32>,
    %c15 = arith.constant 15 : index
    %c0_49 = arith.constant 0 : index
    %60 = vector.load %arg13[%c15, %c0_49] : memref<16x32xf32, #tpu.memory_space<vmem>>, vector<1x16xf32>
    %c0_50 = arith.constant 0 : index
    %c240 = arith.constant 240 : index
    %61 = vector.load %arg14[%c0_50, %c240] : memref<2x256xf32, #tpu.memory_space<vmem>>, vector<1x16xf32>
    tpu.vector_store %arg14[%c0_50, %c240], %60 {strides = array<i32>} : memref<2x256xf32, #tpu.memory_space<vmem>>, vector<1x16xf32>,
    %c0_51 = arith.constant 0 : index
    %c16_52 = arith.constant 16 : index
    %62 = vector.load %arg13[%c0_51, %c16_52] : memref<16x32xf32, #tpu.memory_space<vmem>>, vector<1x16xf32>
    %c1_53 = arith.constant 1 : index
    %c0_54 = arith.constant 0 : index
    %63 = vector.load %arg14[%c1_53, %c0_54] : memref<2x256xf32, #tpu.memory_space<vmem>>, vector<1x16xf32>
    tpu.vector_store %arg14[%c1_53, %c0_54], %62 {strides = array<i32>} : memref<2x256xf32, #tpu.memory_space<vmem>>, vector<1x16xf32>,
    %c1_55 = arith.constant 1 : index
    %c16_56 = arith.constant 16 : index
    %64 = vector.load %arg13[%c1_55, %c16_56] : memref<16x32xf32, #tpu.memory_space<vmem>>, vector<1x16xf32>
    %c1_57 = arith.constant 1 : index
    %c16_58 = arith.constant 16 : index
    %65 = vector.load %arg14[%c1_57, %c16_58] : memref<2x256xf32, #tpu.memory_space<vmem>>, vector<1x16xf32>
    tpu.vector_store %arg14[%c1_57, %c16_58], %64 {strides = array<i32>} : memref<2x256xf32, #tpu.memory_space<vmem>>, vector<1x16xf32>,
    %c2_59 = arith.constant 2 : index
    %c16_60 = arith.constant 16 : index
    %66 = vector.load %arg13[%c2_59, %c16_60] : memref<16x32xf32, #tpu.memory_space<vmem>>, vector<1x16xf32>
    %c1_61 = arith.constant 1 : index
    %c32_62 = arith.constant 32 : index
    %67 = vector.load %arg14[%c1_61, %c32_62] : memref<2x256xf32, #tpu.memory_space<vmem>>, vector<1x16xf32>
    tpu.vector_store %arg14[%c1_61, %c32_62], %66 {strides = array<i32>} : memref<2x256xf32, #tpu.memory_space<vmem>>, vector<1x16xf32>,
    %c3_63 = arith.constant 3 : index
    %c16_64 = arith.constant 16 : index
    %68 = vector.load %arg13[%c3_63, %c16_64] : memref<16x32xf32, #tpu.memory_space<vmem>>, vector<1x16xf32>
    %c1_65 = arith.constant 1 : index
    %c48_66 = arith.constant 48 : index
    %69 = vector.load %arg14[%c1_65, %c48_66] : memref<2x256xf32, #tpu.memory_space<vmem>>, vector<1x16xf32>
    tpu.vector_store %arg14[%c1_65, %c48_66], %68 {strides = array<i32>} : memref<2x256xf32, #tpu.memory_space<vmem>>, vector<1x16xf32>,
    %c4_67 = arith.constant 4 : index
    %c16_68 = arith.constant 16 : index
    %70 = vector.load %arg13[%c4_67, %c16_68] : memref<16x32xf32, #tpu.memory_space<vmem>>, vector<1x16xf32>
    %c1_69 = arith.constant 1 : index
    %c64_70 = arith.constant 64 : index
    %71 = vector.load %arg14[%c1_69, %c64_70] : memref<2x256xf32, #tpu.memory_space<vmem>>, vector<1x16xf32>
    tpu.vector_store %arg14[%c1_69, %c64_70], %70 {strides = array<i32>} : memref<2x256xf32, #tpu.memory_space<vmem>>, vector<1x16xf32>,
    %c5_71 = arith.constant 5 : index
    %c16_72 = arith.constant 16 : index
    %72 = vector.load %arg13[%c5_71, %c16_72] : memref<16x32xf32, #tpu.memory_space<vmem>>, vector<1x16xf32>
    %c1_73 = arith.constant 1 : index
    %c80_74 = arith.constant 80 : index
    %73 = vector.load %arg14[%c1_73, %c80_74] : memref<2x256xf32, #tpu.memory_space<vmem>>, vector<1x16xf32>
    tpu.vector_store %arg14[%c1_73, %c80_74], %72 {strides = array<i32>} : memref<2x256xf32, #tpu.memory_space<vmem>>, vector<1x16xf32>,
    %c6_75 = arith.constant 6 : index
    %c16_76 = arith.constant 16 : index
    %74 = vector.load %arg13[%c6_75, %c16_76] : memref<16x32xf32, #tpu.memory_space<vmem>>, vector<1x16xf32>
    %c1_77 = arith.constant 1 : index
    %c96_78 = arith.constant 96 : index
    %75 = vector.load %arg14[%c1_77, %c96_78] : memref<2x256xf32, #tpu.memory_space<vmem>>, vector<1x16xf32>
    tpu.vector_store %arg14[%c1_77, %c96_78], %74 {strides = array<i32>} : memref<2x256xf32, #tpu.memory_space<vmem>>, vector<1x16xf32>,
    %c7_79 = arith.constant 7 : index
    %c16_80 = arith.constant 16 : index
    %76 = vector.load %arg13[%c7_79, %c16_80] : memref<16x32xf32, #tpu.memory_space<vmem>>, vector<1x16xf32>
    %c1_81 = arith.constant 1 : index
    %c112_82 = arith.constant 112 : index
    %77 = vector.load %arg14[%c1_81, %c112_82] : memref<2x256xf32, #tpu.memory_space<vmem>>, vector<1x16xf32>
    tpu.vector_store %arg14[%c1_81, %c112_82], %76 {strides = array<i32>} : memref<2x256xf32, #tpu.memory_space<vmem>>, vector<1x16xf32>,
    %c8_83 = arith.constant 8 : index
    %c16_84 = arith.constant 16 : index
    %78 = vector.load %arg13[%c8_83, %c16_84] : memref<16x32xf32, #tpu.memory_space<vmem>>, vector<1x16xf32>
    %c1_85 = arith.constant 1 : index
    %c128_86 = arith.constant 128 : index
    %79 = vector.load %arg14[%c1_85, %c128_86] : memref<2x256xf32, #tpu.memory_space<vmem>>, vector<1x16xf32>
    tpu.vector_store %arg14[%c1_85, %c128_86], %78 {strides = array<i32>} : memref<2x256xf32, #tpu.memory_space<vmem>>, vector<1x16xf32>,
    %c9_87 = arith.constant 9 : index
    %c16_88 = arith.constant 16 : index
    %80 = vector.load %arg13[%c9_87, %c16_88] : memref<16x32xf32, #tpu.memory_space<vmem>>, vector<1x16xf32>
    %c1_89 = arith.constant 1 : index
    %c144_90 = arith.constant 144 : index
    %81 = vector.load %arg14[%c1_89, %c144_90] : memref<2x256xf32, #tpu.memory_space<vmem>>, vector<1x16xf32>
    tpu.vector_store %arg14[%c1_89, %c144_90], %80 {strides = array<i32>} : memref<2x256xf32, #tpu.memory_space<vmem>>, vector<1x16xf32>,
    %c10_91 = arith.constant 10 : index
    %c16_92 = arith.constant 16 : index
    %82 = vector.load %arg13[%c10_91, %c16_92] : memref<16x32xf32, #tpu.memory_space<vmem>>, vector<1x16xf32>
    %c1_93 = arith.constant 1 : index
    %c160_94 = arith.constant 160 : index
    %83 = vector.load %arg14[%c1_93, %c160_94] : memref<2x256xf32, #tpu.memory_space<vmem>>, vector<1x16xf32>
    tpu.vector_store %arg14[%c1_93, %c160_94], %82 {strides = array<i32>} : memref<2x256xf32, #tpu.memory_space<vmem>>, vector<1x16xf32>,
    %c11_95 = arith.constant 11 : index
    %c16_96 = arith.constant 16 : index
    %84 = vector.load %arg13[%c11_95, %c16_96] : memref<16x32xf32, #tpu.memory_space<vmem>>, vector<1x16xf32>
    %c1_97 = arith.constant 1 : index
    %c176_98 = arith.constant 176 : index
    %85 = vector.load %arg14[%c1_97, %c176_98] : memref<2x256xf32, #tpu.memory_space<vmem>>, vector<1x16xf32>
    tpu.vector_store %arg14[%c1_97, %c176_98], %84 {strides = array<i32>} : memref<2x256xf32, #tpu.memory_space<vmem>>, vector<1x16xf32>,
    %c12_99 = arith.constant 12 : index
    %c16_100 = arith.constant 16 : index
    %86 = vector.load %arg13[%c12_99, %c16_100] : memref<16x32xf32, #tpu.memory_space<vmem>>, vector<1x16xf32>
    %c1_101 = arith.constant 1 : index
    %c192_102 = arith.constant 192 : index
    %87 = vector.load %arg14[%c1_101, %c192_102] : memref<2x256xf32, #tpu.memory_space<vmem>>, vector<1x16xf32>
    tpu.vector_store %arg14[%c1_101, %c192_102], %86 {strides = array<i32>} : memref<2x256xf32, #tpu.memory_space<vmem>>, vector<1x16xf32>,
    %c13_103 = arith.constant 13 : index
    %c16_104 = arith.constant 16 : index
    %88 = vector.load %arg13[%c13_103, %c16_104] : memref<16x32xf32, #tpu.memory_space<vmem>>, vector<1x16xf32>
    %c1_105 = arith.constant 1 : index
    %c208_106 = arith.constant 208 : index
    %89 = vector.load %arg14[%c1_105, %c208_106] : memref<2x256xf32, #tpu.memory_space<vmem>>, vector<1x16xf32>
    tpu.vector_store %arg14[%c1_105, %c208_106], %88 {strides = array<i32>} : memref<2x256xf32, #tpu.memory_space<vmem>>, vector<1x16xf32>,
    %c14_107 = arith.constant 14 : index
    %c16_108 = arith.constant 16 : index
    %90 = vector.load %arg13[%c14_107, %c16_108] : memref<16x32xf32, #tpu.memory_space<vmem>>, vector<1x16xf32>
    %c1_109 = arith.constant 1 : index
    %c224_110 = arith.constant 224 : index
    %91 = vector.load %arg14[%c1_109, %c224_110] : memref<2x256xf32, #tpu.memory_space<vmem>>, vector<1x16xf32>
    tpu.vector_store %arg14[%c1_109, %c224_110], %90 {strides = array<i32>} : memref<2x256xf32, #tpu.memory_space<vmem>>, vector<1x16xf32>,
    %c15_111 = arith.constant 15 : index
    %c16_112 = arith.constant 16 : index
    %92 = vector.load %arg13[%c15_111, %c16_112] : memref<16x32xf32, #tpu.memory_space<vmem>>, vector<1x16xf32>
    %c1_113 = arith.constant 1 : index
    %c240_114 = arith.constant 240 : index
    %93 = vector.load %arg14[%c1_113, %c240_114] : memref<2x256xf32, #tpu.memory_space<vmem>>, vector<1x16xf32>
    tpu.vector_store %arg14[%c1_113, %c240_114], %92 {strides = array<i32>} : memref<2x256xf32, #tpu.memory_space<vmem>>, vector<1x16xf32>,
    %c0_115 = arith.constant 0 : index
    %c0_116 = arith.constant 0 : index
    %94 = vector.load %arg14[%c0_115, %c0_116] : memref<2x256xf32, #tpu.memory_space<vmem>>, vector<2x256xf32>
    %c0_117 = arith.constant 0 : index
    %c0_118 = arith.constant 0 : index
    %c0_119 = arith.constant 0 : index
    %95 = vector.load %arg7[%c0_117, %c0_118, %c0_119] : memref<2x2x256xf32, #tpu.memory_space<vmem>>, vector<1x2x256xf32>
    %96 = vector.shape_cast %95 : vector<1x2x256xf32> to vector<2x256xf32>
    %cst_120 = arith.constant 0.899999976 : f32
    %97 = vector.broadcast %cst_120 : f32 to vector<2x256xf32>
    %98 = arith.mulf %97, %96 : vector<2x256xf32>
    %99 = arith.addf %94, %98 : vector<2x256xf32>
    %c1_121 = arith.constant 1 : index
    %c0_122 = arith.constant 0 : index
    %c0_123 = arith.constant 0 : index
    %100 = vector.load %arg7[%c1_121, %c0_122, %c0_123] : memref<2x2x256xf32, #tpu.memory_space<vmem>>, vector<1x2x256xf32>
    %101 = vector.shape_cast %100 : vector<1x2x256xf32> to vector<2x256xf32>
    %cst_124 = arith.constant 8.100000e-01 : f32
    %102 = vector.broadcast %cst_124 : f32 to vector<2x256xf32>
    %103 = arith.mulf %102, %101 : vector<2x256xf32>
    %104 = arith.addf %99, %103 : vector<2x256xf32>
    %105 = arith.truncf %104 : vector<2x256xf32> to vector<2x256xbf16>
    %c0_125 = arith.constant 0 : index
    %c0_126 = arith.constant 0 : index
    %106 = vector.load %arg8[%c0_125, %c0_126] : memref<256x32xbf16, #tpu.memory_space<vmem>>, vector<256x32xbf16>
    %cst_127 = arith.constant dense<0.000000e+00> : vector<2x32xf32>
    %107 = tpu.matmul %105, %106, %cst_127 {dimension_numbers = #tpu.dot_dimension_numbers<[1], [0], [0], [1], [0, 0, 1, 1], [], []>} : vector<2x256xbf16>, vector<256x32xbf16>, vector<2x32xf32> -> vector<2x32xf32>
    %c0_128 = arith.constant 0 : index
    %c0_129 = arith.constant 0 : index
    %108 = vector.load %arg9[%c0_128, %c0_129] : memref<1x32xf32, #tpu.memory_space<vmem>>, vector<1x32xf32>
    %109 = vector.broadcast %108 : vector<1x32xf32> to vector<2x32xf32>
    %110 = arith.addf %107, %109 : vector<2x32xf32>
    %cst_130 = arith.constant 0.000000e+00 : f32
    %111 = vector.broadcast %cst_130 : f32 to vector<2x32xf32>
    %112 = arith.maximumf %110, %111 : vector<2x32xf32>
    %113 = arith.truncf %112 : vector<2x32xf32> to vector<2x32xbf16>
    %c0_131 = arith.constant 0 : index
    %c0_132 = arith.constant 0 : index
    %114 = vector.load %arg10[%c0_131, %c0_132] : memref<32x32xbf16, #tpu.memory_space<vmem>>, vector<32x32xbf16>
    %cst_133 = arith.constant dense<0.000000e+00> : vector<2x32xf32>
    %115 = tpu.matmul %113, %114, %cst_133 {dimension_numbers = #tpu.dot_dimension_numbers<[1], [0], [0], [1], [0, 0, 1, 1], [], []>} : vector<2x32xbf16>, vector<32x32xbf16>, vector<2x32xf32> -> vector<2x32xf32>
    %c0_134 = arith.constant 0 : index
    %c0_135 = arith.constant 0 : index
    %116 = vector.load %arg11[%c0_134, %c0_135] : memref<1x32xf32, #tpu.memory_space<vmem>>, vector<1x32xf32>
    %117 = vector.broadcast %116 : vector<1x32xf32> to vector<2x32xf32>
    %118 = arith.addf %115, %117 : vector<2x32xf32>
    %c0_136 = arith.constant 0 : index
    %c0_137 = arith.constant 0 : index
    %119 = vector.load %arg12[%c0_136, %c0_137] : memref<2x32xf32, #tpu.memory_space<vmem>>, vector<2x32xf32>
    tpu.vector_store %arg12[%c0_136, %c0_137], %118 {strides = array<i32>} : memref<2x32xf32, #tpu.memory_space<vmem>>, vector<2x32xf32>,
    return
  }
  func.func @transform_0(%arg0: i32) -> (i32, i32) {
    %c0_i32 = arith.constant 0 : i32
    %c0_i32_0 = arith.constant 0 : i32
    %c0_i32_1 = arith.constant 0 : i32
    return %c0_i32, %c0_i32_0 : i32, i32
  }
  func.func @transform_1(%arg0: i32) -> (i32, i32) {
    %c0_i32 = arith.constant 0 : i32
    %c0_i32_0 = arith.constant 0 : i32
    %c0_i32_1 = arith.constant 0 : i32
    return %c0_i32, %c0_i32_0 : i32, i32
  }
  func.func @transform_2(%arg0: i32) -> (i32, i32) {
    %c0_i32 = arith.constant 0 : i32
    %c0_i32_0 = arith.constant 0 : i32
    %c0_i32_1 = arith.constant 0 : i32
    return %c0_i32, %c0_i32_0 : i32, i32
  }
  func.func @transform_3(%arg0: i32) -> (i32, i32) {
    %c0_i32 = arith.constant 0 : i32
    %c0_i32_0 = arith.constant 0 : i32
    %c0_i32_1 = arith.constant 0 : i32
    return %c0_i32, %c0_i32_0 : i32, i32
  }
  func.func @transform_4(%arg0: i32) -> (i32, i32) {
    %c0_i32 = arith.constant 0 : i32
    %c0_i32_0 = arith.constant 0 : i32
    %c0_i32_1 = arith.constant 0 : i32
    return %c0_i32, %c0_i32_0 : i32, i32
  }
  func.func @transform_5(%arg0: i32) -> (i32, i32) {
    %c0_i32 = arith.constant 0 : i32
    %c0_i32_0 = arith.constant 0 : i32
    %c0_i32_1 = arith.constant 0 : i32
    return %c0_i32, %c0_i32_0 : i32, i32
  }
  func.func @transform_6(%arg0: i32) -> (i32, i32, i32) {
    %c0_i32 = arith.constant 0 : i32
    %c0_i32_0 = arith.constant 0 : i32
    %c0_i32_1 = arith.constant 0 : i32
    %c0_i32_2 = arith.constant 0 : i32
    return %c0_i32, %c0_i32_0, %c0_i32_1 : i32, i32, i32
  }
  func.func @transform_7(%arg0: i32) -> (i32, i32) {
    %c0_i32 = arith.constant 0 : i32
    %c0_i32_0 = arith.constant 0 : i32
    %c0_i32_1 = arith.constant 0 : i32
    return %c0_i32, %c0_i32_0 : i32, i32
  }
  func.func @transform_8(%arg0: i32) -> (i32, i32) {
    %c0_i32 = arith.constant 0 : i32
    %c0_i32_0 = arith.constant 0 : i32
    %c0_i32_1 = arith.constant 0 : i32
    return %c0_i32, %c0_i32_0 : i32, i32
  }
  func.func @transform_9(%arg0: i32) -> (i32, i32) {
    %c0_i32 = arith.constant 0 : i32
    %c0_i32_0 = arith.constant 0 : i32
    %c0_i32_1 = arith.constant 0 : i32
    return %c0_i32, %c0_i32_0 : i32, i32
  }
  func.func @transform_10(%arg0: i32) -> (i32, i32) {
    %c0_i32 = arith.constant 0 : i32
    %c0_i32_0 = arith.constant 0 : i32
    %c0_i32_1 = arith.constant 0 : i32
    return %c0_i32, %c0_i32_0 : i32, i32
  }
  func.func @transform_11(%arg0: i32) -> (i32, i32) {
    %c0_i32 = arith.constant 0 : i32
    %c0_i32_0 = arith.constant 0 : i32
    %c0_i32_1 = arith.constant 0 : i32
    return %c0_i32, %c0_i32_0 : i32, i32
  }
}

</mosaic_0001>

<bundles_post_ra>
// kernel: encoder_forward.1
= control target key start
LH: loop header
LB: loop body
LE: loop exit
PB: predicated region body
PF: predicated region fallthrough
CT: control target
= control target key end

     0   :  { %v1384_v1 = vmov 0.0   ;;  %vm71_vm0 = vcmask 1041408   ;;  %vm1385_vm1 = vmmov 0   ;;  %v1386_v5 = vmov 0   ;;  %s1685_s0 = inlined_call_operand.vmem [shape: bf16[36,128], index: 0, kind: input, shape index: {}]   ;;  %s1686_s1 = inlined_call_operand.vmem [shape: bf16[8,36], index: 1, kind: input, shape index: {}]   ;;  %s1687_s2 = inlined_call_operand.vmem [shape: f32[8,1], index: 2, kind: input, shape index: {}]   ;;  %s1688_s3 = inlined_call_operand.vmem [shape: bf16[128,288], index: 3, kind: input, shape index: {}]   ;;  %s1689_s4 = inlined_call_operand.vmem [shape: bf16[16,72], index: 4, kind: input, shape index: {}]   ;;  %s1690_s5 = inlined_call_operand.vmem [shape: f32[16,1], index: 5, kind: input, shape index: {}]   ;;  %s1691_s6 = inlined_call_operand.vmem [shape: f32[2,2,256], index: 6, kind: input, shape index: {}]   ;;  %s1692_s7 = inlined_call_operand.vmem [shape: bf16[256,32], index: 7, kind: input, shape index: {}]   ;;  %s1693_s8 = inlined_call_operand.vmem [shape: f32[1,32], index: 8, kind: input, shape index: {}]   ;;  %s1694_s9 = inlined_call_operand.vmem [shape: bf16[32,32], index: 9, kind: input, shape index: {}]   ;;  %s1695_s10 = inlined_call_operand.vmem [shape: f32[1,32], index: 10, kind: input, shape index: {}]   ;;  %s1696_s11 = inlined_call_operand.hbm [shape: f32[2,32], index: 11, kind: output, shape index: {}]  }
   0x1   :  { %v1306_v0 = vld [vmem:[%s1685_s0] sm:$0xff]   ;;  %1240 = vmatprep.subr.bf16.mxu1 %v1384_v1  ;;  %v1307_v2 = vld [vmem:[%s1685_s0 + $0x8] sm:$0xff]   ;;  %1250 = vmatprep.subr.bf16.mxu0 %v1384_v1  ;;  %v1308_v3 = vld [vmem:[%s1685_s0 + $0x10] ss:$0 sps:$4 sm:$0x33]   ;;  %vm67_vm2 = vcmask 293888  }
   0x2   :  { %1241 = vmatpush3.bf16.msra.mxu1 %v1306_v0  ;;  %1246 = vmatprep.mubr.msk.bf16.mxu1 %vm1385_vm1, %v1384_v1  ;;  %v46_v4 = vld [vmem:[%s1687_s2] sm:$0xff]  ;;  %v1312_v6 = vld [vmem:[%s1688_s3 + $0x8] ss:$12 sps:$4 sm:$0xff]   ;;  %v73_v7 = vsel %vm71_vm0, %v1308_v3, 0  ;;  %v1324_v16 = vld [vmem:[%s1688_s3 + $0x50] ss:$12 sps:$4 sm:$0xff]  }
   0x3   :  { %1242 = vmatprep.subr.bf16.mxu1 %v1384_v1  ;;  %1304 = vset.pattern.permute.xlu0 %v1386_v5  ;;  %v1311_v8 = vld [vmem:[%s1688_s3 + $0x4] ss:$12 sps:$4 sm:$0xff]   ;;  %v1316_v9 = vld [vmem:[%s1688_s3 + $0x20] ss:$12 sps:$4 sm:$0xff]   ;;  %v1315_v12 = vld [vmem:[%s1688_s3 + $0x1c] ss:$12 sps:$4 sm:$0xff]  }
   0x4   :  { %1266 = vmatprep.mubr.msk.bf16.mxu0 %vm1385_vm1, %v1384_v1  ;;  %49 = vperm.xlu0 %1304, %v46_v4   ;;  %v40_v10 = vld [vmem:[%s1686_s1] sm:$0xf]  ;;  %v1320_v13 = vld [vmem:[%s1688_s3 + $0x38] ss:$12 sps:$4 sm:$0xff]   ;;  %v1317_v17 = vld [vmem:[%s1688_s3 + $0x30] ss:$12 sps:$4 sm:$0xff]  }
   0x5   :  { %1305 = vset.pattern.permute.xlu1 %v1386_v5  ;;  %1251 = vmatpush3.bf16.msra.mxu0 %v1312_v6  ;;  %v1309_v11 = vld [vmem:[%s1688_s3] ss:$12 sps:$4 sm:$0xff]   ;;  %v1313_v14 = vld [vmem:[%s1688_s3 + $0x18] ss:$12 sps:$4 sm:$0xff]   ;;  %v1328_v19 = vld [vmem:[%s1688_s3 + $0x68] ss:$12 sps:$4 sm:$0xff]  }
   0x6   :  { %1243 = vmatpush3.bf16.msra.mxu1 %v1307_v2  ;;  %1252 = vmatprep.subr.bf16.mxu0 %v1384_v1  ;;  %v1319_v15 = vld [vmem:[%s1688_s3 + $0x34] ss:$12 sps:$4 sm:$0xff]   ;;  %v1323_v18 = vld [vmem:[%s1688_s3 + $0x4c] ss:$12 sps:$4 sm:$0xff]   ;;  %v1327_v21 = vld [vmem:[%s1688_s3 + $0x64] ss:$12 sps:$4 sm:$0xff]  }
   0x7   :  { %1244 = vmatprep.subr.bf16.mxu1 %v1384_v1  ;;  %v1321_v20 = vld [vmem:[%s1688_s3 + $0x48] ss:$12 sps:$4 sm:$0xff]   ;;  %v1332_v22 = vld [vmem:[%s1688_s3 + $0x80] ss:$12 sps:$4 sm:$0xff]   ;;  %v1336_v25 = vld [vmem:[%s1688_s3 + $0x98] ss:$12 sps:$4 sm:$0xff]  }
   0x8   :  { %v1325_v23 = vld [vmem:[%s1688_s3 + $0x60] ss:$12 sps:$4 sm:$0xff]   ;;  %v1331_v24 = vld [vmem:[%s1688_s3 + $0x7c] ss:$12 sps:$4 sm:$0xff]   ;;  %v1329_v26 = vld [vmem:[%s1688_s3 + $0x78] ss:$12 sps:$4 sm:$0xff]  }
   0x9   :  { %1253 = vmatpush3.bf16.msra.mxu0 %v1316_v9  ;;  %v1335_v27 = vld [vmem:[%s1688_s3 + $0x94] ss:$12 sps:$4 sm:$0xff]   ;;  %v1333_v28 = vld [vmem:[%s1688_s3 + $0x90] ss:$12 sps:$4 sm:$0xff]  }
   0xa   :  { %1245 = vmatpush3.bf16.msra.mxu1 %v73_v7  ;;  %1254 = vmatprep.subr.bf16.mxu0 %v1384_v1 }
   0xb   :  { %277 = vmatprep.subr.bf16.mxu1 %v1311_v8 }
   0xd   :  { %1247 = vmatmul.mubr.msk.bf16.vlgmr.msra.gmra.mrb[0].mxu1 %vm67_vm2, %v40_v10  ;;  %1255 = vmatpush3.bf16.msra.mxu0 %v1320_v13 }
   0xe   :  { %278 = vmatpush1.bf16.msra.mxu1 %v1309_v11  ;;  %309 = vmatprep.mubr.bf16.mxu1 %v1386_v5 }
   0xf   :  { %279 = vmatprep.subr.bf16.mxu1 %v1315_v12  ;;  %1256 = vmatprep.subr.bf16.mxu0 %v1384_v1 }
  0x11   :  { %1257 = vmatpush3.bf16.msra.mxu0 %v1324_v16 }
  0x12   :  { %280 = vmatpush1.bf16.msra.mxu1 %v1313_v14  ;;  %1258 = vmatprep.subr.bf16.mxu0 %v1384_v1 }
  0x13   :  { %281 = vmatprep.subr.bf16.mxu1 %v1319_v15 }
  0x15   :  { %1259 = vmatpush3.bf16.msra.mxu0 %v1328_v19 }
  0x16   :  { %282 = vmatpush1.bf16.msra.mxu1 %v1317_v17  ;;  %1260 = vmatprep.subr.bf16.mxu0 %v1384_v1 }
  0x17   :  { %283 = vmatprep.subr.bf16.mxu1 %v1323_v18 }
  0x19   :  { %1261 = vmatpush3.bf16.msra.mxu0 %v1332_v22 }
  0x1a   :  { %284 = vmatpush1.bf16.msra.mxu1 %v1321_v20  ;;  %1262 = vmatprep.subr.bf16.mxu0 %v1384_v1 }
  0x1b   :  { %285 = vmatprep.subr.bf16.mxu1 %v1327_v21 }
  0x1d   :  { %1263 = vmatpush3.bf16.msra.mxu0 %v1336_v25 }
  0x1e   :  { %286 = vmatpush1.bf16.msra.mxu1 %v1325_v23  ;;  %1264 = vmatprep.subr.bf16.mxu0 %v1384_v1 }
  0x1f   :  { %287 = vmatprep.subr.bf16.mxu1 %v1331_v24 }
  0x22   :  { %288 = vmatpush1.bf16.msra.mxu1 %v1329_v26 }
  0x23   :  { %16 = vsyncpa [#allocation5], 0  ;;  %289 = vmatprep.subr.bf16.mxu1 %v1335_v27  ;;  %v1339_v29 = vld [vmem:[%s1688_s3 + $0xac] ss:$12 sps:$4 sm:$0xff]   ;;  %v1337_v30 = vld [vmem:[%s1688_s3 + $0xa8] ss:$12 sps:$4 sm:$0xff]  }
  0x24   :  { %v1340_v31 = vld [vmem:[%s1688_s3 + $0xb0] ss:$12 sps:$4 sm:$0xff]   ;;  %s1387_s3 = smov 64   ;;  %s1388_s29 = smov 96   ;;  %v386_v48 = vld [vmem:[%s1690_s5 + $0x8] sm:$0xff]  ;;  %v385_v49 = vld [vmem:[%s1690_s5] sm:$0xff] }
  0x25   :  { %1265 = vmatpush3.bf16.msra.mxu0 %v1340_v31  ;;  %s1389_s30 = smov 32   ;;  %vm406_vm3 = vcmask 1043456   ;;  %v1341_v62 = vld [vmem:[%s1689_s4] sm:$0xff]   ;;  %vm402_vm4 = vcmask 588800   ;;  %vm453_vm5 = vcmask 261120   ;;  %vm457_vm6 = vcmask 122880  }
  0x26   :  { %290 = vmatpush1.bf16.msra.mxu1 %v1333_v28  ;;  %s1390_s4 = smov 112   ;;  %s1391_s17 = smov 16   ;;  %v1342_v22 = vld [vmem:[%s1692_s7 + $0x40] sm:$0xff]   ;;  %v1344_v25 = vld [vmem:[%s1692_s7 + $0x48] sm:$0xff]   ;;  %v1346_v28 = vld [vmem:[%s1692_s7 + $0x50] sm:$0xff]   ;;  %vm471_vm7 = vcmask 254080  }
  0x27   :  { %291 = vmatprep.subr.bf16.mxu1 %v1339_v29  ;;  %s1392_s1 = smov 48   ;;  %1215 = vmatprep.subr.bf16.mxu0 %v1342_v22  ;;  %v1343_v23 = vld [vmem:[%s1692_s7] sm:$0xff]   ;;  %s1393_s24 = smov 80   ;;  %v1345_v27 = vld [vmem:[%s1692_s7 + $0x8] sm:$0xff]   ;;  %v1347_v29 = vld [vmem:[%s1692_s7 + $0x10] sm:$0xff]   ;;  %vm485_vm8 = vcmask 385280  }
  0x28   :  { %v1348_v31 = vld [vmem:[%s1692_s7 + $0x58] sm:$0xff]   ;;  %vm499_vm9 = vcmask 516480   ;;  %vm513_vm10 = vcmask 647680   ;;  %vm527_vm11 = vcmask 778880   ;;  %vm541_vm12 = vcmask 910080  }
  0x29   :  { %vm555_vm13 = vcmask 1041280   ;;  %vm1100_vm14 = vcmask 254976  }
  0x2a   :  { %292 = vmatpush1.bf16.msra.mxu1 %v1337_v30 }
  0x2b   :  { %1270 = vmatprep.subr.bf16.mxu1 %v1384_v1 }
  0x83   :  { %v50_v32 = vpop.permute.xlu0 %49 }
  0xe0   :  { %v109_v33 = vpop.f32.mrb[0].mxu1 }
  0xe1   :  { %v110_v34 = vadd.f32 %v109_v33, %v50_v32  ;;  %v1248_v35 = vpop.f32.mrb[1].mxu1  ;;  %v1349_v33 = vld [vmem:[%s1692_s7 + $0x18] sm:$0xff]  }
  0xe2   :  { %v112_v36 = vpop.f32.mrb[2].mxu1  ;;  %v1351_v35 = vld [vmem:[%s1692_s7 + $0x20] sm:$0xff]  }
  0xe3   :  { %v115_v37 = vmax.f32 %v110_v34, 0.0  ;;  %v1249_v38 = vpop.f32.mrb[3].mxu1  ;;  %v1350_v34 = vld [vmem:[%s1692_s7 + $0x60] sm:$0xff]   ;;  %v1352_v36 = vld [vmem:[%s1692_s7 + $0x68] sm:$0xff]  }
  0xe4   :  { %v1353_v38 = vld [vmem:[%s1692_s7 + $0x28] sm:$0xff]  }
  0xe5   :  { %v116_v39 = vpack.c.bf16 %v115_v37, %v115_v37 }
  0xe7   :  { %310 = vmatmul.mubr.bf16.vlgmr.msra.gmra.mrb[4].mxu1 %v116_v39  ;;  %1267 = vmatmul.mubr.bf16.vlgmr.msra.gmra.mrb[0].mxu0 %v116_v39  ;;  %v1354_v39 = vld [vmem:[%s1692_s7 + $0x70] sm:$0xff]  }
  0xe8   :  { %1280 = vmatprep.mubr.msk.bf16.mxu1 %vm1385_vm1, %v1384_v1  ;;  %1216 = vmatpush3.bf16.msra.mxu0 %v1343_v23 }
  0xe9   :  { %1217 = vmatprep.subr.bf16.mxu0 %v1344_v25 }
  0xec   :  { %1218 = vmatpush3.bf16.msra.mxu0 %v1345_v27 }
  0xed   :  { %1219 = vmatprep.subr.bf16.mxu0 %v1346_v28  ;;  %v1358_v28 = vld [vmem:[%s1694_s9] sm:$0xff]  }
  0xf0   :  { %1220 = vmatpush3.bf16.msra.mxu0 %v1347_v29  ;;  %v1359_v29 = vld [vmem:[%s1694_s9 + $0x8] sm:$0xff]   ;;  %s1395_s9 = smov [#allocation4]  }
  0xf1   :  { %1221 = vmatprep.subr.bf16.mxu0 %v1348_v31  ;;  %v1175_v31 = vld [vmem:[%s1693_s8] ss:$0 sm:$0xff]  ;;  %s1108_s5 = sshll.u32 %s1395_s9, 4  ;;  %s1109_s5 = int_to_ptr.vmem [resolvable:$true] %s1108_s5 }
  0xf2   :  { %s1360_s8 = scalar_lea.vmem %s1109_s5, 32  ;;  %p1365_p1 = scmp.lt.s32.totalorder %s1109_s5, %s1109_s5 }
  0xf3   :  { %p1361_p0 = scmp.ne.s32.totalorder %s1109_s5, %s1360_s8  ;;  %p1366_p2 = scmp.lt.s32.totalorder %s1360_s8, %s1360_s8 }
  0xf4   :  { %1222 = vmatpush3.bf16.msra.mxu0 %v1349_v33 }
  0xf5   :  { %1223 = vmatprep.subr.bf16.mxu0 %v1350_v34  ;;  %p1367_p3 = por %p1366_p2, %p1365_p1 }
  0xf7   :  { %p1368_p4 = pnand %p1367_p3, %p1361_p0 }
  0xf8   :  { %1224 = vmatpush3.bf16.msra.mxu0 %v1351_v35 }
  0xf9   :  { %1225 = vmatprep.subr.bf16.mxu0 %v1352_v36 }
  0xfc   :  { %1226 = vmatpush3.bf16.msra.mxu0 %v1353_v38 }
  0xfd   :  { %1227 = vmatprep.subr.bf16.mxu0 %v1354_v39  ;;  %v1192_v39 = vld [vmem:[%s1695_s10] ss:$0 sm:$0xff] }
 0x1ba   :  { %v311_v40 = vpop.f32.mrb[4].mxu1  ;;  %v352_v41 = vpop.f32.mrb[0].mxu0 }
 0x1bb   :  { %v1268_v42 = vpop.f32.mrb[1].mxu0  ;;  %362 = vrot.lane.b32.xlu1 %v311_v40, %s1387_s3  ;;  %359 = vrot.lane.b32.xlu0 %v311_v40, %s1388_s29  ;;  %v313_v43 = vpop.f32.mrb[5].mxu1  ;;  %v384_v60 = vpack.c.bf16 %v352_v41, %v352_v41  ;;  %v1355_v41 = vld [vmem:[%s1692_s7 + $0x30] sm:$0xff]  }
 0x1bc   :  { %v315_v44 = vpop.f32.mrb[6].mxu1  ;;  %v355_v45 = vpop.f32.mrb[2].mxu0  ;;  %v1356_v42 = vld [vmem:[%s1692_s7 + $0x78] sm:$0xff]   ;;  %1228 = vmatpush3.bf16.msra.mxu0 %v1355_v41 }
 0x1bd   :  { %v316_v46 = vpop.f32.mrb[7].mxu1  ;;  %v1269_v47 = vpop.f32.mrb[3].mxu0  ;;  %v408_v61 = vsel %vm406_vm3, %v384_v60, 0  ;;  %1229 = vmatprep.subr.bf16.mxu0 %v1356_v42 }
 0x1bf   :  { %365 = vrot.lane.b32.xlu1 %v311_v40, %s1389_s30  ;;  %369 = vrot.lane.b32.xlu0 %v313_v43, %s1388_s29 }
 0x1c3   :  { %372 = vrot.lane.b32.xlu1 %v313_v43, %s1387_s3  ;;  %375 = vrot.lane.b32.xlu0 %v313_v43, %s1389_s30 }
 0x1c7   :  { %394 = vperm.xlu0 %1304, %v386_v48   ;;  %389 = vperm.xlu1 %1305, %v385_v49  }
 0x22d   :  { %v363_v50 = vpop.permute.xlu1 %362  ;;  %v360_v51 = vpop.permute.xlu0 %359 }
 0x22e   :  { %v380_v52 = vpack.c.bf16 %v360_v51, %v311_v40 }
 0x230   :  { %1271 = vmatpush3.bf16.msra.mxu1 %v380_v52 }
 0x231   :  { %v366_v53 = vpop.permute.xlu1 %365  ;;  %v370_v54 = vpop.permute.xlu0 %369  ;;  %1272 = vmatprep.subr.bf16.mxu1 %v1384_v1 }
 0x232   :  { %v381_v55 = vpack.c.bf16 %v366_v53, %v363_v50  ;;  %v382_v56 = vpack.c.bf16 %v370_v54, %v313_v43  ;;  %v1357_v43 = vld [vmem:[%s1692_s7 + $0x38] sm:$0xff]  }
 0x233   :  { %1230 = vmatpush3.bf16.msra.mxu0 %v1357_v43 }
 0x234   :  { %1273 = vmatpush3.bf16.msra.mxu1 %v381_v55 }
 0x235   :  { %1274 = vmatprep.subr.bf16.mxu1 %v1384_v1  ;;  %v373_v57 = vpop.permute.xlu1 %372  ;;  %v376_v58 = vpop.permute.xlu0 %375 }
 0x236   :  { %v383_v59 = vpack.c.bf16 %v376_v58, %v373_v57 }
 0x238   :  { %1275 = vmatpush3.bf16.msra.mxu1 %v382_v56 }
 0x239   :  { %1276 = vmatprep.subr.bf16.mxu1 %v1384_v1 }
 0x23c   :  { %1277 = vmatpush3.bf16.msra.mxu1 %v383_v59 }
 0x23d   :  { %1278 = vmatprep.subr.bf16.mxu1 %v1384_v1 }
 0x240   :  { %1279 = vmatpush3.bf16.msra.mxu1 %v408_v61 }
 0x241   :  { %1284 = vmatprep.subr.bf16.mxu1 %v1384_v1 }
 0x243   :  { %1281 = vmatmul.mubr.msk.bf16.vlgmr.msra.gmra.mrb[8].mxu1 %vm402_vm4, %v1341_v62 }
 0x244   :  { %1288 = vmatprep.mubr.msk.bf16.mxu1 %vm1385_vm1, %v1384_v1  ;;  %1285 = vmatpush3.bf16.msra.mxu1 %v1358_v28 }
 0x245   :  { %1286 = vmatprep.subr.bf16.mxu1 %v1384_v1 }
 0x246   :  { %v390_v63 = vpop.permute.xlu1 %389  ;;  %v395_v4 = vpop.permute.xlu0 %394 }
 0x248   :  { %1287 = vmatpush3.bf16.msra.mxu1 %v1359_v29 }
 0x316   :  { %v444_v0 = vpop.f32.mrb[8].mxu1 }
 0x317   :  { %v445_v2 = vadd.f32 %v444_v0, %v390_v63  ;;  %v1282_v3 = vpop.f32.mrb[9].mxu1 }
 0x318   :  { %v447_v5 = vpop.f32.mrb[10].mxu1 }
 0x319   :  { %v451_v6 = vmax.f32 %v445_v2, 0.0  ;;  %v448_v7 = vadd.f32 %v447_v5, %v395_v4  ;;  %v1283_v8 = vpop.f32.mrb[11].mxu1 }
 0x31b   :  { %454 = vst.msk [vmem:[#allocation2] sm:$0xff] %vm453_vm5, %v451_v6  ;;  %v452_v9 = vmax.f32 %v448_v7, 0.0 }
 0x31d   :  { %455 = vst.msk [vmem:[#allocation2 + $0x8] sm:$0xff] %vm453_vm5, %v452_v9 }
 0x322   :  { %v1160_v10 = vld.sshfl [vmem:[#allocation2] sm:$0x1 pattern:$0x76325410]  ;;  %v663_v45 = vld [vmem:[#allocation2 + $0x1] sm:$0x1] }
 0x323   :  { %659 = vrot.lane.b32.xlu1 %v1160_v10, %s1390_s4  ;;  %v456_v11 = vld [vmem:[#allocation2] sm:$0x1]  ;;  %v1146_v14 = vld.sshfl [vmem:[#allocation2 + $0x1] sm:$0x1 pattern:$0x76325410] }
 0x324   :  { %v1167_v12 = vld.sshfl [vmem:[#allocation2 + $0x8] sm:$0x1 pattern:$0x76325410]  ;;  %458 = vst.msk [vmem:[#allocation3] sm:$0x1] %vm457_vm6, %v456_v11 }
 0x325   :  { %752 = vrot.lane.b32.xlu0 %v1167_v12, %s1390_s4  ;;  %v557_v13 = vld [vmem:[#allocation2 + $0x8] sm:$0x1]  ;;  %v1153_v15 = vld.sshfl [vmem:[#allocation2 + $0x9] sm:$0x1 pattern:$0x76325410] }
 0x326   :  { %558 = vst.msk [vmem:[#allocation3 + $0x2] sm:$0x1] %vm457_vm6, %v557_v13  ;;  %v1147_v16 = vld.sshfl [vmem:[#allocation2 + $0x2] sm:$0x1 pattern:$0x76325410]  ;;  %v848_v13 = vlaneseq }
 0x327   :  { %468 = vrot.lane.b32.xlu1 %v1146_v14, %s1391_s17  ;;  %v1154_v17 = vld.sshfl [vmem:[#allocation2 + $0xa] sm:$0x1 pattern:$0x76325410]  ;;  %v756_v47 = vld [vmem:[#allocation2 + $0x9] sm:$0x1] }
 0x328   :  { %v1148_v18 = vld.sshfl [vmem:[#allocation2 + $0x3] sm:$0x1 pattern:$0x76325410]  ;;  %v1394_v11 = vmov 1983009808  }
 0x329   :  { %568 = vrot.lane.b32.xlu0 %v1153_v15, %s1391_s17  ;;  %v1155_v19 = vld.sshfl [vmem:[#allocation2 + $0xb] sm:$0x1 pattern:$0x76325410]  ;;  %v846_v12 = vunpack.c.l.s4 %v1394_v11  ;;  %v837_v14 = vld [vmem:[%s1691_s6] sm:$0xf] }
 0x32a   :  { %v1149_v20 = vld.sshfl [vmem:[#allocation2 + $0x4] sm:$0x1 pattern:$0x76325410] }
 0x32b   :  { %482 = vrot.lane.b32.xlu1 %v1147_v16, %s1389_s30  ;;  %v1156_v21 = vld.sshfl [vmem:[#allocation2 + $0xc] sm:$0x1 pattern:$0x76325410]  ;;  %v1174_v15 = vld [vmem:[%s1691_s6 + $0x4] sm:$0xf] }
 0x32c   :  { %v1150_v24 = vld.sshfl [vmem:[#allocation2 + $0x5] sm:$0x1 pattern:$0x76325410] }
 0x32d   :  { %581 = vrot.lane.b32.xlu0 %v1154_v17, %s1389_s30  ;;  %v1157_v26 = vld.sshfl [vmem:[#allocation2 + $0xd] sm:$0x1 pattern:$0x76325410] }
 0x32e   :  { %v1151_v30 = vld.sshfl [vmem:[#allocation2 + $0x6] sm:$0x1 pattern:$0x76325410] }
 0x32f   :  { %674 = vrot.lane.b32.xlu1 %v1147_v16, %s1391_s17  ;;  %v1158_v32 = vld.sshfl [vmem:[#allocation2 + $0xe] sm:$0x1 pattern:$0x76325410]  ;;  %v838_v16 = vmul.f32 0.9, %v837_v14 }
 0x330   :  { %v1152_v37 = vld.sshfl [vmem:[#allocation2 + $0x7] sm:$0x1 pattern:$0x76325410] }
 0x331   :  { %767 = vrot.lane.b32.xlu0 %v1154_v17, %s1391_s17  ;;  %v1159_v40 = vld.sshfl [vmem:[#allocation2 + $0xf] sm:$0x1 pattern:$0x76325410]  ;;  %v847_v17 = vunpack.c.0.s8 %v846_v12 }
 0x333   :  { %496 = vrot.lane.b32.xlu1 %v1148_v18, %s1392_s1 }
 0x335   :  { %594 = vrot.lane.b32.xlu0 %v1155_v19, %s1392_s1 }
 0x337   :  { %687 = vrot.lane.b32.xlu1 %v1148_v18, %s1389_s30  ;;  %v849_v18 = vshrl.u32 %v848_v13, 7 }
 0x339   :  { %780 = vrot.lane.b32.xlu0 %v1155_v19, %s1389_s30  ;;  %v842_v19 = vmul.f32 0.81, %v1174_v15  ;;  %v850_v22 = vsub.s32 %v847_v17, %v849_v18 }
 0x33b   :  { %510 = vrot.lane.b32.xlu1 %v1149_v20, %s1387_s3 }
 0x33d   :  { %607 = vrot.lane.b32.xlu0 %v1156_v21, %s1387_s3 }
 0x33f   :  { %700 = vrot.lane.b32.xlu1 %v1149_v20, %s1392_s1 }
 0x341   :  { %793 = vrot.lane.b32.xlu0 %v1156_v21, %s1392_s1 }
 0x343   :  { %524 = vrot.lane.b32.xlu1 %v1150_v24, %s1393_s24 }
 0x345   :  { %620 = vrot.lane.b32.xlu0 %v1157_v26, %s1393_s24 }
 0x347   :  { %713 = vrot.lane.b32.xlu1 %v1150_v24, %s1387_s3 }
 0x349   :  { %806 = vrot.lane.b32.xlu0 %v1157_v26, %s1387_s3 }
 0x34b   :  { %538 = vrot.lane.b32.xlu1 %v1151_v30, %s1388_s29 }
 0x34d   :  { %633 = vrot.lane.b32.xlu0 %v1158_v32, %s1388_s29 }
 0x34f   :  { %726 = vrot.lane.b32.xlu1 %v1151_v30, %s1393_s24 }
 0x351   :  { %819 = vrot.lane.b32.xlu0 %v1158_v32, %s1393_s24 }
 0x353   :  { %552 = vrot.lane.b32.xlu1 %v1152_v37, %s1390_s4 }
 0x355   :  { %646 = vrot.lane.b32.xlu0 %v1159_v40, %s1390_s4 }
 0x357   :  { %739 = vrot.lane.b32.xlu1 %v1152_v37, %s1388_s29 }
 0x359   :  { %832 = vrot.lane.b32.xlu0 %v1159_v40, %s1388_s29 }
 0x395   :  { %v660_v44 = vpop.permute.xlu1 %659 }
 0x396   :  { %662 = vst.msk [vmem:[#allocation3 + $0x1] sm:$0x1] %vm457_vm6, %v660_v44 }
 0x397   :  { %664 = vst.msk [vmem:[#allocation3 + $0x1] sm:$0x1] %vm471_vm7, %v663_v45  ;;  %v753_v46 = vpop.permute.xlu0 %752 }
 0x398   :  { %755 = vst.msk [vmem:[#allocation3 + $0x3] sm:$0x1] %vm457_vm6, %v753_v46 }
 0x399   :  { %757 = vst.msk [vmem:[#allocation3 + $0x3] sm:$0x1] %vm471_vm7, %v756_v47  ;;  %v469_v48 = vpop.permute.xlu1 %468 }
 0x39a   :  { %472 = vst.msk [vmem:[#allocation3] sm:$0x1] %vm471_vm7, %v469_v48 }
 0x39b   :  { %v569_v49 = vpop.permute.xlu0 %568 }
 0x39c   :  { %571 = vst.msk [vmem:[#allocation3 + $0x2] sm:$0x1] %vm471_vm7, %v569_v49 }
 0x39d   :  { %v483_v50 = vpop.permute.xlu1 %482 }
 0x39e   :  { %486 = vst.msk [vmem:[#allocation3] sm:$0x1] %vm485_vm8, %v483_v50 }
 0x39f   :  { %v582_v51 = vpop.permute.xlu0 %581 }
 0x3a0   :  { %584 = vst.msk [vmem:[#allocation3 + $0x2] sm:$0x1] %vm485_vm8, %v582_v51 }
 0x3a1   :  { %v675_v52 = vpop.permute.xlu1 %674 }
 0x3a2   :  { %677 = vst.msk [vmem:[#allocation3 + $0x1] sm:$0x1] %vm485_vm8, %v675_v52 }
 0x3a3   :  { %v768_v53 = vpop.permute.xlu0 %767 }
 0x3a4   :  { %770 = vst.msk [vmem:[#allocation3 + $0x3] sm:$0x1] %vm485_vm8, %v768_v53 }
 0x3a5   :  { %v497_v54 = vpop.permute.xlu1 %496 }
 0x3a6   :  { %500 = vst.msk [vmem:[#allocation3] sm:$0x1] %vm499_vm9, %v497_v54 }
 0x3a7   :  { %v595_v55 = vpop.permute.xlu0 %594 }
 0x3a8   :  { %597 = vst.msk [vmem:[#allocation3 + $0x2] sm:$0x1] %vm499_vm9, %v595_v55 }
 0x3a9   :  { %v688_v56 = vpop.permute.xlu1 %687 }
 0x3aa   :  { %690 = vst.msk [vmem:[#allocation3 + $0x1] sm:$0x1] %vm499_vm9, %v688_v56 }
 0x3ab   :  { %v781_v57 = vpop.permute.xlu0 %780 }
 0x3ac   :  { %783 = vst.msk [vmem:[#allocation3 + $0x3] sm:$0x1] %vm499_vm9, %v781_v57 }
 0x3ad   :  { %v511_v58 = vpop.permute.xlu1 %510 }
 0x3ae   :  { %514 = vst.msk [vmem:[#allocation3] sm:$0x1] %vm513_vm10, %v511_v58 }
 0x3af   :  { %v608_v59 = vpop.permute.xlu0 %607 }
 0x3b0   :  { %610 = vst.msk [vmem:[#allocation3 + $0x2] sm:$0x1] %vm513_vm10, %v608_v59 }
 0x3b1   :  { %v701_v60 = vpop.permute.xlu1 %700 }
 0x3b2   :  { %703 = vst.msk [vmem:[#allocation3 + $0x1] sm:$0x1] %vm513_vm10, %v701_v60 }
 0x3b3   :  { %v794_v61 = vpop.permute.xlu0 %793 }
 0x3b4   :  { %796 = vst.msk [vmem:[#allocation3 + $0x3] sm:$0x1] %vm513_vm10, %v794_v61 }
 0x3b5   :  { %v525_v62 = vpop.permute.xlu1 %524 }
 0x3b6   :  { %528 = vst.msk [vmem:[#allocation3] sm:$0x1] %vm527_vm11, %v525_v62 }
 0x3b7   :  { %v621_v63 = vpop.permute.xlu0 %620 }
 0x3b8   :  { %623 = vst.msk [vmem:[#allocation3 + $0x2] sm:$0x1] %vm527_vm11, %v621_v63 }
 0x3b9   :  { %v714_v0 = vpop.permute.xlu1 %713 }
 0x3ba   :  { %716 = vst.msk [vmem:[#allocation3 + $0x1] sm:$0x1] %vm527_vm11, %v714_v0 }
 0x3bb   :  { %v807_v2 = vpop.permute.xlu0 %806 }
 0x3bc   :  { %809 = vst.msk [vmem:[#allocation3 + $0x3] sm:$0x1] %vm527_vm11, %v807_v2 }
 0x3bd   :  { %v539_v3 = vpop.permute.xlu1 %538 }
 0x3be   :  { %542 = vst.msk [vmem:[#allocation3] sm:$0x1] %vm541_vm12, %v539_v3 }
 0x3bf   :  { %v634_v4 = vpop.permute.xlu0 %633 }
 0x3c0   :  { %636 = vst.msk [vmem:[#allocation3 + $0x2] sm:$0x1] %vm541_vm12, %v634_v4 }
 0x3c1   :  { %v727_v5 = vpop.permute.xlu1 %726 }
 0x3c2   :  { %729 = vst.msk [vmem:[#allocation3 + $0x1] sm:$0x1] %vm541_vm12, %v727_v5 }
 0x3c3   :  { %v820_v6 = vpop.permute.xlu0 %819 }
 0x3c4   :  { %822 = vst.msk [vmem:[#allocation3 + $0x3] sm:$0x1] %vm541_vm12, %v820_v6 }
 0x3c5   :  { %v553_v7 = vpop.permute.xlu1 %552 }
 0x3c6   :  { %556 = vst.msk [vmem:[#allocation3] sm:$0x1] %vm555_vm13, %v553_v7 }
 0x3c7   :  { %v647_v8 = vpop.permute.xlu0 %646 }
 0x3c8   :  { %649 = vst.msk [vmem:[#allocation3 + $0x2] sm:$0x1] %vm555_vm13, %v647_v8 }
 0x3c9   :  { %v740_v9 = vpop.permute.xlu1 %739 }
 0x3ca   :  { %742 = vst.msk [vmem:[#allocation3 + $0x1] sm:$0x1] %vm555_vm13, %v740_v9 }
 0x3cb   :  { %v833_v10 = vpop.permute.xlu0 %832 }
 0x3cc   :  { %835 = vst.msk [vmem:[#allocation3 + $0x3] sm:$0x1] %vm555_vm13, %v833_v10 }
 0x3d3   :  { %v836_v20 = vld [vmem:[#allocation3] sm:$0xf] }
 0x3d4   :  { %v839_v21 = vadd.f32 %v838_v16, %v836_v20 }
 0x3d6   :  { %v843_v23 = vadd.f32 %v842_v19, %v839_v21 }
 0x3d8   :  { %v851_v24 = vrot.slane %v843_v23, %v850_v22 }
 0x3da   :  { %v852_v25 = vcombine.high %v851_v24, %v851_v24  ;;  %v855_v27 = vpack.c.bf16 %v851_v24, %v851_v24 }
 0x3dc   :  { %v856_v26 = vpack.c.bf16 %v852_v25, %v852_v25 }
 0x3de   :  { %1024 = vmatprep.mubr.bf16.mxu0 %v856_v26 }
 0x3df   :  { %1025 = vmatmul.mubr.bf16.vlgmr.msra.gmra.mrb[4].mxu0 %v855_v27 }
 0x4b2   :  { %v1231_v30 = vpop.f32.mrb[4].mxu0 }
 0x4b3   :  { %v1232_v32 = vpop.f32.mrb[5].mxu0 }
 0x4b4   :  { %v1233_v33 = vadd.f32 %v1232_v32, %v1231_v30  ;;  %v1234_v34 = vpop.f32.mrb[6].mxu0 }
 0x4b5   :  { %v1235_v35 = vpop.f32.mrb[7].mxu0 }
 0x4b6   :  { %v1027_v36 = vadd.f32 %v1233_v33, %v1175_v31 }
 0x4b8   :  { %v1032_v37 = vmax.f32 %v1027_v36, 0.0 }
 0x4ba   :  { %v1033_v38 = vpack.c.bf16 %v1032_v37, %v1032_v37 }
 0x4bc   :  { %1289 = vmatmul.mubr.msk.bf16.vlgmr.msra.gmra.mrb[12].mxu1 %vm453_vm5, %v1033_v38 }
 0x58f   :  { %v1094_v1 = vpop.f32.mrb[12].mxu1 }
 0x590   :  { %v1095_v40 = vadd.f32 %v1192_v39, %v1094_v1  ;;  %v1290_v41 = vpop.f32.mrb[13].mxu1 }
 0x591   :  { %v1097_v42 = vpop.f32.mrb[14].mxu1 }
 0x592   :  { %v1291_v43 = vpop.f32.mrb[15].mxu1  ;;  %1101 = vst.msk [vmem:[#allocation4] sm:$0x3] %vm1100_vm14, %v1095_v40 }
 0x593   :  { %1371 = shalt.err (!%p1368_p4)
}
 0x594   :  { %s1372_s10 = scalar_lea.hbm %s1696_s11, 32 }
 0x595   :  { %p1373_p5 = scmp.ne.s32.totalorder %s1696_s11, %s1372_s10  ;;  %p1376_p6 = scmp.lt.u32.totalorder %s1372_s10, %s1696_s11 }
 0x597   :  { %p1378_p7 = pnand %p1376_p6, %p1373_p5 }
 0x599   :  { %1381 = shalt.err (!%p1378_p7)
}
 0x59a   :  { %1111 = dma.vmem_to_hbm [thread:$0]  %s1109_s5, 32, %s1696_s11, [#allocation5]  }
 0x59b   :  { %1382 = dma.done.wait [#allocation5], 32  }
 0x59c   :  { %1383 = vsyncadd [#allocation5], 4294967264 }
 0x59d   :  { %1115 = vsyncpa [#allocation5], 1 }

</bundles_post_ra>
